<compile_context>
chip_gen: v7x
topology: tpu7x:2x2x1
jax: 0.10.0
libtpu: 0.0.40
codegen_flags: <defaults>
</compile_context>

<pallas_src>
import functools

import jax
import jax.numpy as jnp
from jax import lax
from jax.experimental import pallas as pl
from jax.experimental.pallas import tpu as pltpu


def _mine_agent_kernel(obs_ref, w1_ref, b1_ref, w2_ref, b2_ref, out_ref, *,
                       act_dim):
    """Fused actor+critic forward for one batch tile.

    Layouts (all f32):
      obs_ref : (TB, D)
      w1_ref  : (D, 2H)    = [W1_actor | W1_critic]   (lane concat)
      b1_ref  : (1, 2H)
      w2_ref  : (2H, OUT)  block-diagonal: rows 0:H, cols 0:A   = W2_actor
                                           rows H:,  col  A     = W2_critic
      b2_ref  : (1, OUT)
      out_ref : (TB, OUT)  packed: [0:A]=logits, [A]=val, [A+1]=logp, [A+2]=act
    """
    obs = obs_ref[...]                                           # (TB, D)

    # ---- fused first layer: one well-shaped (N = 2H) MXU matmul ----
    h = jnp.dot(obs, w1_ref[...], preferred_element_type=jnp.float32)
    h = jnp.maximum(h + b1_ref[...], 0.0)                        # (TB, 2H)

    # ---- fused block-diagonal second layer -> [logits | val | 0...] ----
    y = jnp.dot(h, w2_ref[...], preferred_element_type=jnp.float32)
    y = y + b2_ref[...]                                          # (TB, OUT)

    tb, out_w = y.shape
    col = lax.broadcasted_iota(jnp.int32, (tb, out_w), 1)

    # ---- Categorical head on the first `act_dim` lanes ----
    logits_m = jnp.where(col < act_dim, y, -jnp.inf)
    maxv = jnp.max(logits_m, axis=-1, keepdims=True)             # (TB, 1)
    # mode() == argmax, first-max tie-break (matches torch / jnp.argmax)
    act = jnp.min(jnp.where(logits_m == maxv, col, out_w),
                  axis=-1, keepdims=True)                        # (TB, 1) i32
    # stable log-sum-exp; padded lanes contribute exp(-inf) == 0
    lse = maxv + jnp.log(jnp.sum(jnp.exp(logits_m - maxv),
                                 axis=-1, keepdims=True))        # (TB, 1)
    logp = jnp.sum(jnp.where(col == act, y - lse, 0.0),
                   axis=-1, keepdims=True)                       # (TB, 1)

    # ---- single lane-dense packed store (one unmasked vst per tile) ----
    packed = jnp.where(col <= act_dim, y, 0.0)                   # logits + val
    packed = packed + jnp.where(col == act_dim + 1, logp, 0.0)
    packed = packed + jnp.where(col == act_dim + 2,
                                act.astype(jnp.float32), 0.0)
    out_ref[...] = packed


def pack_params(params):
    """Pack actor/critic weights into the two fused MXU-friendly matrices."""
    w1a, b1a = params["w1a"], params["b1a"]
    w2a, b2a = params["w2a"], params["b2a"]
    w1c, b1c = params["w1c"], params["b1c"]
    w2c, b2c = params["w2c"], params["b2c"]
    _, h = w1a.shape
    a = w2a.shape[1]
    # Lane-dense output width: logits(A) + val(1) + logp(1) + act(1), >= 128.
    out_w = max(128, ((a + 3 + 127) // 128) * 128)

    w1 = jnp.concatenate([w1a, w1c], axis=1)                     # (D, 2H)
    b1 = jnp.concatenate([b1a, b1c], axis=1)                     # (1, 2H)

    w2 = jnp.zeros((2 * h, out_w), jnp.float32)                  # block-diag
    w2 = w2.at[:h, :a].set(w2a)                                  # actor block
    w2 = w2.at[h:, a:a + 1].set(w2c)                             # critic block
    b2 = jnp.zeros((1, out_w), jnp.float32)
    b2 = b2.at[:, :a].set(b2a)
    b2 = b2.at[:, a:a + 1].set(b2c)
    return dict(w1=w1, b1=b1, w2=w2, b2=b2)


@functools.partial(jax.jit, static_argnames=("act_dim",))
def mine_agent_forward(obs, packed, *, act_dim):
    """Fused actor+critic forward (MineAgent.forward_actor_critic)."""
    b, d = obs.shape
    w1, b1, w2, b2 = packed["w1"], packed["b1"], packed["w2"], packed["b2"]
    h2 = w1.shape[1]
    out_w = w2.shape[1]

    # Batch tiling: large tiles amortize the per-grid-step overhead while the
    # double-buffered footprint (obs + out + resident weights) stays ~3.5 MiB,
    # far under scoped VMEM on v5e/v6e/v7x.  Tiny batches collapse to one
    # single grid step padded to a sublane multiple of 8.
    tile_b = min(1024, ((b + 7) // 8) * 8)
    b_pad = ((b + tile_b - 1) // tile_b) * tile_b
    if b_pad != b:
        obs = jnp.pad(obs, ((0, b_pad - b), (0, 0)))
    grid = (b_pad // tile_b,)

    flops = 2 * b_pad * (d * h2 + h2 * out_w)
    bytes_accessed = 4 * (b_pad * d + d * h2 + h2 + h2 * out_w + out_w
                          + b_pad * out_w)
    cost = pl.CostEstimate(flops=flops,
                           transcendentals=b_pad * (out_w + 1),
                           bytes_accessed=bytes_accessed)

    kernel = functools.partial(_mine_agent_kernel, act_dim=act_dim)
    packed_out = pl.pallas_call(
        kernel,
        out_shape=jax.ShapeDtypeStruct((b_pad, out_w), jnp.float32),
        grid=grid,
        in_specs=[
            pl.BlockSpec((tile_b, d), lambda i: (i, 0)),     # obs batch tile
            pl.BlockSpec((d, h2), lambda i: (0, 0)),         # W1 (resident)
            pl.BlockSpec((1, h2), lambda i: (0, 0)),         # b1
            pl.BlockSpec((h2, out_w), lambda i: (0, 0)),     # W2 (resident)
            pl.BlockSpec((1, out_w), lambda i: (0, 0)),      # b2
        ],
        out_specs=pl.BlockSpec((tile_b, out_w), lambda i: (i, 0)),
        compiler_params=pltpu.CompilerParams(
            dimension_semantics=("parallel",)),
        cost_estimate=cost,
    )(obs, w1, b1, w2, b2)

    out = packed_out[:b]
    logits = out[:, :act_dim]
    val = out[:, act_dim]
    logp = out[:, act_dim + 1]
    act = out[:, act_dim + 2].astype(jnp.int32)
    return dict(logits=logits, act=act, logp=logp, val=val)


def _init_params(key, obs_dim, hidden, act_dim):
    """Deterministic PyTorch-Linear-style init: U(-1/sqrt(fan_in), +)."""
    ks = jax.random.split(key, 8)

    def lin(kw, kb, fan_in, fan_out):
        bound = 1.0 / jnp.sqrt(jnp.float32(fan_in))
        w = jax.random.uniform(kw, (fan_in, fan_out), jnp.float32, -bound, bound)
        b = jax.random.uniform(kb, (1, fan_out), jnp.float32, -bound, bound)
        return w, b

    w1a, b1a = lin(ks[0], ks[1], obs_dim, hidden)
    w2a, b2a = lin(ks[2], ks[3], hidden, act_dim)
    w1c, b1c = lin(ks[4], ks[5], obs_dim, hidden)
    w2c, b2c = lin(ks[6], ks[7], hidden, 1)
    return dict(w1a=w1a, b1a=b1a, w2a=w2a, b2a=b2a,
                w1c=w1c, b1c=b1c, w2c=w2c, b2c=b2c)


def _reference(obs, p):
    h_a = jnp.maximum(obs @ p["w1a"] + p["b1a"], 0.0)
    logits = h_a @ p["w2a"] + p["b2a"]
    h_c = jnp.maximum(obs @ p["w1c"] + p["b1c"], 0.0)
    val = (h_c @ p["w2c"] + p["b2c"])[:, 0]
    act = jnp.argmax(logits, axis=-1).astype(jnp.int32)
    logp_all = jax.nn.log_softmax(logits, axis=-1)
    logp = jnp.take_along_axis(logp_all, act[:, None], axis=-1)[:, 0]
    return dict(logits=logits, act=act, logp=logp, val=val)


if __name__ == "__main__":
    B, D, H, A = 8, 32, 128, 16   # batch, obs dim, hidden, action dim

    key = jax.random.PRNGKey(0)
    k_obs, k_par = jax.random.split(key)
    obs = jax.random.normal(k_obs, (B, D), jnp.float32)
    params = _init_params(k_par, D, H, A)
    packed = pack_params(params)

    out = mine_agent_forward(obs, packed, act_dim=A)
    jax.block_until_ready(out)

    ref = _reference(obs, params)
    assert jnp.allclose(out["logits"], ref["logits"], atol=1e-4, rtol=1e-4)
    assert jnp.array_equal(out["act"], ref["act"])
    assert jnp.allclose(out["logp"], ref["logp"], atol=1e-4, rtol=1e-4)
    assert jnp.allclose(out["val"], ref["val"], atol=1e-4, rtol=1e-4)

    print("KERNEL_OK")
</pallas_src>

<mosaic_0001>
module attributes {stable_mosaic.version = 11 : i64} {
  func.func @_mine_agent_kernel(%arg0: i32, %arg1: memref<8x32xf32, #tpu.memory_space<vmem>>, %arg2: memref<32x256xf32, #tpu.memory_space<vmem>>, %arg3: memref<1x256xf32, #tpu.memory_space<vmem>>, %arg4: memref<256x128xf32, #tpu.memory_space<vmem>>, %arg5: memref<1x128xf32, #tpu.memory_space<vmem>>, %arg6: memref<8x128xf32, #tpu.memory_space<vmem>>) attributes {dimension_semantics = [#tpu.dimension_semantics<parallel>], iteration_bounds = array<i64: 1>, scalar_prefetch = 0 : i64, scratch_operands = 0 : i64, tpu.core_type = #tpu.core_type<tc>, window_params = [{transform_indices = @transform_0, window_bounds = array<i64: 8, 32>}, {pipeline_mode = #tpu.pipeline_mode<synchronous>, transform_indices = @transform_1, window_bounds = array<i64: 32, 256>}, {pipeline_mode = #tpu.pipeline_mode<synchronous>, transform_indices = @transform_2, window_bounds = array<i64: 1, 256>}, {pipeline_mode = #tpu.pipeline_mode<synchronous>, transform_indices = @transform_3, window_bounds = array<i64: 256, 128>}, {pipeline_mode = #tpu.pipeline_mode<synchronous>, transform_indices = @transform_4, window_bounds = array<i64: 1, 128>}, {transform_indices = @transform_5, window_bounds = array<i64: 8, 128>}]} {
    %c0 = arith.constant 0 : index
    %c0_0 = arith.constant 0 : index
    %0 = vector.load %arg1[%c0, %c0_0] : memref<8x32xf32, #tpu.memory_space<vmem>>, vector<8x32xf32>
    %c0_1 = arith.constant 0 : index
    %c0_2 = arith.constant 0 : index
    %1 = vector.load %arg2[%c0_1, %c0_2] : memref<32x256xf32, #tpu.memory_space<vmem>>, vector<32x256xf32>
    %cst = arith.constant dense<0.000000e+00> : vector<8x256xf32>
    %2 = tpu.matmul %0, %1, %cst {dimension_numbers = #tpu.dot_dimension_numbers<[1], [0], [0], [1], [0, 0, 1, 1], [], []>} : vector<8x32xf32>, vector<32x256xf32>, vector<8x256xf32> -> vector<8x256xf32>
    %c0_3 = arith.constant 0 : index
    %c0_4 = arith.constant 0 : index
    %3 = vector.load %arg3[%c0_3, %c0_4] : memref<1x256xf32, #tpu.memory_space<vmem>>, vector<1x256xf32>
    %4 = vector.broadcast %3 : vector<1x256xf32> to vector<8x256xf32>
    %5 = arith.addf %2, %4 : vector<8x256xf32>
    %cst_5 = arith.constant 0.000000e+00 : f32
    %6 = vector.broadcast %cst_5 : f32 to vector<8x256xf32>
    %7 = arith.maximumf %5, %6 : vector<8x256xf32>
    %c0_6 = arith.constant 0 : index
    %c0_7 = arith.constant 0 : index
    %8 = vector.load %arg4[%c0_6, %c0_7] : memref<256x128xf32, #tpu.memory_space<vmem>>, vector<256x128xf32>
    %cst_8 = arith.constant dense<0.000000e+00> : vector<8x128xf32>
    %9 = tpu.matmul %7, %8, %cst_8 {dimension_numbers = #tpu.dot_dimension_numbers<[1], [0], [0], [1], [0, 0, 1, 1], [], []>} : vector<8x256xf32>, vector<256x128xf32>, vector<8x128xf32> -> vector<8x128xf32>
    %c0_9 = arith.constant 0 : index
    %c0_10 = arith.constant 0 : index
    %10 = vector.load %arg5[%c0_9, %c0_10] : memref<1x128xf32, #tpu.memory_space<vmem>>, vector<1x128xf32>
    %11 = vector.broadcast %10 : vector<1x128xf32> to vector<8x128xf32>
    %12 = arith.addf %9, %11 : vector<8x128xf32>
    %13 = tpu.iota {dimensions = array<i32: 1>} : vector<8x128xi32>
    %c16_i32 = arith.constant 16 : i32
    %14 = vector.broadcast %c16_i32 : i32 to vector<8x128xi32>
    %15 = arith.cmpi slt, %13, %14 : vector<8x128xi32>
    %cst_11 = arith.constant 0xFF800000 : f32
    %16 = vector.broadcast %cst_11 : f32 to vector<8x128xf32>
    %17 = arith.select %15, %12, %16 : vector<8x128xi1>, vector<8x128xf32>
    %cst_12 = arith.constant dense<0xFF800000> : vector<8xf32>
    %18 = vector.multi_reduction <maximumf>, %17, %cst_12 [1] : vector<8x128xf32> to vector<8xf32>
    %19 = vector.shape_cast %18 : vector<8xf32> to vector<8x1xf32>
    %20 = vector.broadcast %19 : vector<8x1xf32> to vector<8x128xf32>
    %21 = arith.cmpf oeq, %17, %20 : vector<8x128xf32>
    %c128_i32 = arith.constant 128 : i32
    %22 = vector.broadcast %c128_i32 : i32 to vector<8x128xi32>
    %23 = arith.select %21, %13, %22 : vector<8x128xi1>, vector<8x128xi32>
    %cst_13 = arith.constant dense<2147483647> : vector<8xi32>
    %24 = vector.multi_reduction <minsi>, %23, %cst_13 [1] : vector<8x128xi32> to vector<8xi32>
    %25 = vector.shape_cast %24 : vector<8xi32> to vector<8x1xi32>
    %26 = vector.broadcast %19 : vector<8x1xf32> to vector<8x128xf32>
    %27 = arith.subf %17, %26 : vector<8x128xf32>
    %28 = math.exp %27 : vector<8x128xf32>
    %cst_14 = arith.constant dense<0.000000e+00> : vector<8xf32>
    %29 = vector.multi_reduction <add>, %28, %cst_14 [1] : vector<8x128xf32> to vector<8xf32>
    %30 = vector.shape_cast %29 : vector<8xf32> to vector<8x1xf32>
    %31 = math.log %30 : vector<8x1xf32>
    %32 = arith.addf %19, %31 : vector<8x1xf32>
    %33 = vector.broadcast %25 : vector<8x1xi32> to vector<8x128xi32>
    %34 = arith.cmpi eq, %13, %33 : vector<8x128xi32>
    %35 = vector.broadcast %32 : vector<8x1xf32> to vector<8x128xf32>
    %36 = arith.subf %12, %35 : vector<8x128xf32>
    %cst_15 = arith.constant 0.000000e+00 : f32
    %37 = vector.broadcast %cst_15 : f32 to vector<8x128xf32>
    %38 = arith.select %34, %36, %37 : vector<8x128xi1>, vector<8x128xf32>
    %cst_16 = arith.constant dense<0.000000e+00> : vector<8xf32>
    %39 = vector.multi_reduction <add>, %38, %cst_16 [1] : vector<8x128xf32> to vector<8xf32>
    %40 = vector.shape_cast %39 : vector<8xf32> to vector<8x1xf32>
    %c16_i32_17 = arith.constant 16 : i32
    %41 = vector.broadcast %c16_i32_17 : i32 to vector<8x128xi32>
    %42 = arith.cmpi sle, %13, %41 : vector<8x128xi32>
    %cst_18 = arith.constant 0.000000e+00 : f32
    %43 = vector.broadcast %cst_18 : f32 to vector<8x128xf32>
    %44 = arith.select %42, %12, %43 : vector<8x128xi1>, vector<8x128xf32>
    %c17_i32 = arith.constant 17 : i32
    %45 = vector.broadcast %c17_i32 : i32 to vector<8x128xi32>
    %46 = arith.cmpi eq, %13, %45 : vector<8x128xi32>
    %cst_19 = arith.constant 0.000000e+00 : f32
    %47 = vector.shape_cast %40 : vector<8x1xf32> to vector<8x1xf32>
    %48 = vector.broadcast %47 : vector<8x1xf32> to vector<8x128xf32>
    %49 = vector.broadcast %cst_19 : f32 to vector<8x128xf32>
    %50 = arith.select %46, %48, %49 : vector<8x128xi1>, vector<8x128xf32>
    %51 = arith.addf %44, %50 : vector<8x128xf32>
    %c18_i32 = arith.constant 18 : i32
    %52 = vector.broadcast %c18_i32 : i32 to vector<8x128xi32>
    %53 = arith.cmpi eq, %13, %52 : vector<8x128xi32>
    %54 = arith.sitofp %25 : vector<8x1xi32> to vector<8x1xf32>
    %cst_20 = arith.constant 0.000000e+00 : f32
    %55 = vector.shape_cast %54 : vector<8x1xf32> to vector<8x1xf32>
    %56 = vector.broadcast %55 : vector<8x1xf32> to vector<8x128xf32>
    %57 = vector.broadcast %cst_20 : f32 to vector<8x128xf32>
    %58 = arith.select %53, %56, %57 : vector<8x128xi1>, vector<8x128xf32>
    %59 = arith.addf %51, %58 : vector<8x128xf32>
    %c0_21 = arith.constant 0 : index
    %c0_22 = arith.constant 0 : index
    %60 = vector.load %arg6[%c0_21, %c0_22] : memref<8x128xf32, #tpu.memory_space<vmem>>, vector<8x128xf32>
    tpu.vector_store %arg6[%c0_21, %c0_22], %59 {strides = array<i32>} : memref<8x128xf32, #tpu.memory_space<vmem>>, vector<8x128xf32>,
    return
  }
  func.func @transform_0(%arg0: i32) -> (i32, i32) {
    %c0_i32 = arith.constant 0 : i32
    %c0_i32_0 = arith.constant 0 : i32
    return %arg0, %c0_i32 : i32, i32
  }
  func.func @transform_1(%arg0: i32) -> (i32, i32) {
    %c0_i32 = arith.constant 0 : i32
    %c0_i32_0 = arith.constant 0 : i32
    %c0_i32_1 = arith.constant 0 : i32
    return %c0_i32, %c0_i32_0 : i32, i32
  }
  func.func @transform_2(%arg0: i32) -> (i32, i32) {
    %c0_i32 = arith.constant 0 : i32
    %c0_i32_0 = arith.constant 0 : i32
    %c0_i32_1 = arith.constant 0 : i32
    return %c0_i32, %c0_i32_0 : i32, i32
  }
  func.func @transform_3(%arg0: i32) -> (i32, i32) {
    %c0_i32 = arith.constant 0 : i32
    %c0_i32_0 = arith.constant 0 : i32
    %c0_i32_1 = arith.constant 0 : i32
    return %c0_i32, %c0_i32_0 : i32, i32
  }
  func.func @transform_4(%arg0: i32) -> (i32, i32) {
    %c0_i32 = arith.constant 0 : i32
    %c0_i32_0 = arith.constant 0 : i32
    %c0_i32_1 = arith.constant 0 : i32
    return %c0_i32, %c0_i32_0 : i32, i32
  }
  func.func @transform_5(%arg0: i32) -> (i32, i32) {
    %c0_i32 = arith.constant 0 : i32
    %c0_i32_0 = arith.constant 0 : i32
    return %arg0, %c0_i32 : i32, i32
  }
}

</mosaic_0001>

<bundles_post_ra>
// kernel: mine_agent_forward.1
= control target key start
LH: loop header
LB: loop body
LE: loop exit
PB: predicated region body
PF: predicated region fallthrough
CT: control target
= control target key end

     0   :  { %10 = vsyncpa [#allocation3], 0  ;;  %s559_s0 = inlined_call_operand.hbm [shape: f32[8,32], index: 0, kind: input, shape index: {}]   ;;  %s560_s1 = inlined_call_operand.hbm [shape: f32[32,256], index: 1, kind: input, shape index: {}]   ;;  %s561_s2 = inlined_call_operand.vmem [shape: f32[1,256], index: 2, kind: input, shape index: {}]   ;;  %s562_s3 = inlined_call_operand.hbm [shape: f32[256,128], index: 3, kind: input, shape index: {}]   ;;  %s563_s4 = inlined_call_operand.vmem [shape: f32[1,128], index: 4, kind: input, shape index: {}]   ;;  %s564_s5 = inlined_call_operand.vmem [shape: f32[8,128], index: 5, kind: output, shape index: {}]  }
   0x1   :  { %11 = vsyncpa [#allocation5], 0  ;;  %s476_s18 = smov [#allocation4]   ;;  %s406_s22 = scalar_lea.hbm %s560_s1, 1024 }
   0x2   :  { %s27_s19 = sshll.u32 %s476_s18, 4  ;;  %p407_p0 = scmp.ne.s32.totalorder %s560_s1, %s406_s22  ;;  %s28_s19 = int_to_ptr.vmem [resolvable:$true] %s27_s19 }
   0x3   :  { %p410_p1 = scmp.lt.u32.totalorder %s406_s22, %s560_s1 }
   0x5   :  { %p412_p2 = pnand %p410_p1, %p407_p0 }
   0x7   :  { %415 = shalt.err (!%p412_p2)
}
   0x8   :  { %s416_s27 = scalar_lea.vmem %s28_s19, 1024  ;;  %p421_p4 = scmp.lt.s32.totalorder %s28_s19, %s28_s19 }
   0x9   :  { %p417_p3 = scmp.ne.s32.totalorder %s28_s19, %s416_s27  ;;  %p422_p5 = scmp.lt.s32.totalorder %s416_s27, %s416_s27 }
   0xb   :  { %p423_p6 = por %p422_p5, %p421_p4 }
   0xd   :  { %p424_p7 = pnand %p423_p6, %p417_p3 }
   0xf   :  { %427 = shalt.err (!%p424_p7)
}
  0x10   :  { %s477_s28 = smov 256   ;;  %s478_s29 = smov 16  }
  0x11   :  { %33 = dma.hbm_to_vmem [thread:$0]  %s560_s1, 1024, %s28_s19, [#allocation5], %s477_s28, %s477_s28, %s478_s29  }
  0x12   :  { %s479_s7 = smov [#allocation2]   ;;  %s480_s9 = smov [#allocation6]  }
  0x13   :  { %s18_s8 = sshll.u32 %s479_s7, 4  ;;  %s41_s10 = sshll.u32 %s480_s9, 4  ;;  %s19_s8 = int_to_ptr.vmem [resolvable:$true] %s18_s8  ;;  %s42_s10 = int_to_ptr.vmem [resolvable:$true] %s41_s10 }
  0x14   :  { %s428_s13 = scalar_lea.hbm %s559_s0, 128 }
  0x15   :  { %p429_p8 = scmp.ne.s32.totalorder %s559_s0, %s428_s13  ;;  %p432_p9 = scmp.lt.u32.totalorder %s428_s13, %s559_s0 }
  0x17   :  { %p434_p10 = pnand %p432_p9, %p429_p8 }
  0x19   :  { %437 = shalt.err (!%p434_p10)
}
  0x1a   :  { %s438_s1 = scalar_lea.vmem %s19_s8, 128  ;;  %p443_p12 = scmp.lt.s32.totalorder %s19_s8, %s19_s8 }
  0x1b   :  { %p439_p11 = scmp.ne.s32.totalorder %s19_s8, %s438_s1  ;;  %p444_p13 = scmp.lt.s32.totalorder %s438_s1, %s438_s1 }
  0x1d   :  { %p445_p0 = por %p444_p13, %p443_p12 }
  0x1f   :  { %p446_p1 = pnand %p445_p0, %p439_p11 }
  0x21   :  { %449 = shalt.err (!%p446_p1)
}
  0x22   :  { %21 = dma.hbm_to_vmem [thread:$0]  %s559_s0, 128, %s19_s8, [#allocation3]  }
  0x23   :  { %s450_s22 = scalar_lea.hbm %s562_s3, 4096 }
  0x24   :  { %p451_p2 = scmp.ne.s32.totalorder %s562_s3, %s450_s22  ;;  %p454_p3 = scmp.lt.u32.totalorder %s450_s22, %s562_s3 }
  0x26   :  { %p456_p4 = pnand %p454_p3, %p451_p2 }
  0x28   :  { %459 = shalt.err (!%p456_p4)
}
  0x29   :  { %s460_s27 = scalar_lea.vmem %s42_s10, 4096  ;;  %p465_p6 = scmp.lt.s32.totalorder %s42_s10, %s42_s10 }
  0x2a   :  { %p461_p5 = scmp.ne.s32.totalorder %s42_s10, %s460_s27  ;;  %p466_p7 = scmp.lt.s32.totalorder %s460_s27, %s460_s27 }
  0x2c   :  { %p467_p8 = por %p466_p7, %p465_p6 }
  0x2e   :  { %p468_p9 = pnand %p467_p8, %p461_p5 }
  0x30   :  { %471 = shalt.err (!%p468_p9)
}
  0x31   :  { %s481_s0 = smov 128   ;;  %s482_s28 = smov 8  }
  0x32   :  { %47 = dma.hbm_to_vmem [thread:$0]  %s562_s3, 4096, %s42_s10, [#allocation5], %s481_s0, %s481_s0, %s482_s28  }
  0x33   :  { %472 = dma.done.wait [#allocation3], 128  }
  0x34   :  { %473 = vsyncadd [#allocation3], 4294967168 }
  0x35   :  { %474 = dma.done.wait [#allocation5], 5120  }
  0x36   :  { %475 = vsyncadd [#allocation5], 4294962176  ;;  %v483_v0 = vmov 0.0   ;;  %v61_v1 = vld [vmem:[#allocation4 + $0x8] sm:$0xff]  ;;  %v63_v2 = vld [vmem:[#allocation4 + $0x18] sm:$0xff]  ;;  %vm80_vm0 = vcmask 261120   ;;  %v70_v62 = vlaneseq }
  0x37   :  { %148 = vmatprep.mubr.f32.mxu0 %v483_v0  ;;  %v60_v3 = vld [vmem:[#allocation4] sm:$0xff]  ;;  %v354_v4 = vpack.c.bf16 %v63_v2, %v61_v1  ;;  %v62_v5 = vld [vmem:[#allocation4 + $0x10] sm:$0xff]  ;;  %v65_v6 = vld [vmem:[#allocation4 + $0x28] sm:$0xff] }
  0x38   :  { %v67_v7 = vld [vmem:[#allocation4 + $0x38] sm:$0xff]  ;;  %v356_v8 = vpack.c.bf16 %v62_v5, %v60_v3  ;;  %v64_v10 = vld [vmem:[#allocation4 + $0x20] sm:$0xff]  ;;  %v66_v11 = vld [vmem:[#allocation4 + $0x30] sm:$0xff]  ;;  %v71_v63 = vshrl.u32 %v70_v62, 7 }
  0x39   :  { %v358_v9 = vpack.c.bf16 %v67_v7, %v65_v6  ;;  %355 = vmatprep.subr.bf16.mxu0 %v354_v4  ;;  %v173_v12 = vld [vmem:[#allocation6 + $0x80] sm:$0xff]  ;;  %v174_v13 = vld [vmem:[#allocation6 + $0x88] sm:$0xff]  ;;  %v360_v15 = vpack.c.bf16 %v66_v11, %v64_v10  ;;  %v175_v18 = vld [vmem:[#allocation6 + $0x90] sm:$0xff]  ;;  %v267_v11 = vand.u32 127, %v70_v62 }
  0x3a   :  { %v157_v14 = vld [vmem:[#allocation6] sm:$0xff]  ;;  %357 = vmatpush1.bf16.msra.mxu0 %v356_v8  ;;  %v362_v16 = vpack.c.bf16 %v174_v13, %v173_v12  ;;  %v158_v17 = vld [vmem:[#allocation6 + $0x8] sm:$0xff]  ;;  %v176_v19 = vld [vmem:[#allocation6 + $0x98] sm:$0xff]  ;;  %v72_v0 = vsub.s32 0, %v71_v63  ;;  %v76_v2 = vsub.s32 1, %v71_v63 }
  0x3b   :  { %359 = vmatprep.subr.bf16.mxu0 %v358_v9  ;;  %v364_v20 = vpack.c.bf16 %v158_v17, %v157_v14  ;;  %v366_v21 = vpack.c.bf16 %v176_v19, %v175_v18  ;;  %v159_v22 = vld [vmem:[#allocation6 + $0x10] sm:$0xff]  ;;  %v160_v23 = vld [vmem:[#allocation6 + $0x18] sm:$0xff]  ;;  %v177_v24 = vld [vmem:[#allocation6 + $0xa0] sm:$0xff]  ;;  %vm268_vm1 = vcmp.lt.s32.totalorder %v267_v11, 16  ;;  %vm301_vm5 = vcmp.le.s32.totalorder %v267_v11, 16 }
  0x3c   :  { %363 = vmatprep.subr.bf16.mxu1 %v362_v16  ;;  %v178_v25 = vld [vmem:[#allocation6 + $0xa8] sm:$0xff]  ;;  %v368_v26 = vpack.c.bf16 %v160_v23, %v159_v22  ;;  %v59_v27 = vld [vmem:[#allocation2] sm:$0xff]  ;;  %v161_v29 = vld [vmem:[#allocation6 + $0x20] sm:$0xff]  ;;  %vm303_vm6 = vcmp.eq.s32.totalorder %v267_v11, 17  ;;  %vm306_vm7 = vcmp.eq.s32.totalorder %v267_v11, 18 }
  0x3d   :  { %365 = vmatpush3.bf16.msra.mxu1 %v364_v20  ;;  %v370_v28 = vpack.c.bf16 %v178_v25, %v177_v24  ;;  %v162_v30 = vld [vmem:[#allocation6 + $0x28] sm:$0xff]  ;;  %v179_v31 = vld [vmem:[#allocation6 + $0xb0] sm:$0xff]  ;;  %v180_v32 = vld [vmem:[#allocation6 + $0xb8] sm:$0xff] }
  0x3e   :  { %361 = vmatpush1.bf16.msra.mxu0 %v360_v15  ;;  %367 = vmatprep.subr.bf16.mxu1 %v366_v21  ;;  %v372_v33 = vpack.c.bf16 %v162_v30, %v161_v29  ;;  %v374_v34 = vpack.c.bf16 %v180_v32, %v179_v31  ;;  %v163_v35 = vld [vmem:[#allocation6 + $0x30] sm:$0xff]  ;;  %v164_v36 = vld [vmem:[#allocation6 + $0x38] sm:$0xff]  ;;  %v181_v37 = vld [vmem:[#allocation6 + $0xc0] sm:$0xff] }
  0x3f   :  { %v182_v38 = vld [vmem:[#allocation6 + $0xc8] sm:$0xff]  ;;  %v376_v39 = vpack.c.bf16 %v164_v36, %v163_v35  ;;  %v165_v41 = vld [vmem:[#allocation6 + $0x40] sm:$0xff]  ;;  %v183_v43 = vld [vmem:[#allocation6 + $0xd0] sm:$0xff] }
  0x40   :  { %v378_v40 = vpack.c.bf16 %v182_v38, %v181_v37  ;;  %v166_v42 = vld [vmem:[#allocation6 + $0x48] sm:$0xff]  ;;  %v184_v44 = vld [vmem:[#allocation6 + $0xd8] sm:$0xff]  ;;  %v167_v47 = vld [vmem:[#allocation6 + $0x50] sm:$0xff] }
  0x41   :  { %317 = vmatmul.mubr.msk.f32.vlgmr.msra.gmra.mrb[0].mxu0 %vm80_vm0, %v59_v27  ;;  %369 = vmatpush3.bf16.msra.mxu1 %v368_v26  ;;  %v380_v45 = vpack.c.bf16 %v166_v42, %v165_v41  ;;  %v382_v46 = vpack.c.bf16 %v184_v44, %v183_v43  ;;  %v168_v48 = vld [vmem:[#allocation6 + $0x58] sm:$0xff]  ;;  %v185_v49 = vld [vmem:[#allocation6 + $0xe0] sm:$0xff]  ;;  %v186_v50 = vld [vmem:[#allocation6 + $0xe8] sm:$0xff] }
  0x42   :  { %371 = vmatprep.subr.bf16.mxu1 %v370_v28  ;;  %v384_v51 = vpack.c.bf16 %v168_v48, %v167_v47  ;;  %v386_v52 = vpack.c.bf16 %v186_v50, %v185_v49  ;;  %v169_v53 = vld [vmem:[#allocation6 + $0x60] sm:$0xff]  ;;  %v170_v54 = vld [vmem:[#allocation6 + $0x68] sm:$0xff]  ;;  %v187_v56 = vld [vmem:[#allocation6 + $0xf0] sm:$0xff] }
  0x43   :  { %v388_v55 = vpack.c.bf16 %v170_v54, %v169_v53  ;;  %v188_v57 = vld [vmem:[#allocation6 + $0xf8] sm:$0xff]  ;;  %v171_v59 = vld [vmem:[#allocation6 + $0x70] sm:$0xff] }
  0x44   :  { %v390_v58 = vpack.c.bf16 %v188_v57, %v187_v56  ;;  %v172_v60 = vld [vmem:[#allocation6 + $0x78] sm:$0xff]  ;;  %v68_v1 = vld [vmem:[%s561_s2] sm:$0x3] }
  0x45   :  { %373 = vmatpush3.bf16.msra.mxu1 %v372_v33  ;;  %v392_v61 = vpack.c.bf16 %v172_v60, %v171_v59  ;;  %v73_v3 = vrot.slane %v68_v1, %v72_v0  ;;  %v77_v4 = vrot.slane %v68_v1, %v76_v2  ;;  %v318_v13 = vld [vmem:[%s563_s4] ss:$0 sm:$0xff] }
  0x46   :  { %375 = vmatprep.subr.bf16.mxu1 %v374_v34 }
  0x49   :  { %377 = vmatpush3.bf16.msra.mxu1 %v376_v39 }
  0x4a   :  { %379 = vmatprep.subr.bf16.mxu1 %v378_v40 }
  0x4d   :  { %381 = vmatpush3.bf16.msra.mxu1 %v380_v45 }
  0x4e   :  { %383 = vmatprep.subr.bf16.mxu1 %v382_v46 }
  0x51   :  { %385 = vmatpush3.bf16.msra.mxu1 %v384_v51 }
  0x52   :  { %387 = vmatprep.subr.bf16.mxu1 %v386_v52 }
  0x55   :  { %389 = vmatpush3.bf16.msra.mxu1 %v388_v55 }
  0x56   :  { %391 = vmatprep.subr.bf16.mxu1 %v390_v58 }
  0x59   :  { %393 = vmatpush3.bf16.msra.mxu1 %v392_v61 }
 0x114   :  { %v150_v5 = vpop.f32.mrb[0].mxu0 }
 0x115   :  { %v151_v6 = vadd.f32 %v150_v5, %v73_v3  ;;  %v152_v7 = vpop.f32.mrb[1].mxu0 }
 0x116   :  { %v153_v8 = vadd.f32 %v152_v7, %v77_v4 }
 0x117   :  { %v155_v10 = vmax.f32 %v151_v6, 0.0 }
 0x118   :  { %v156_v9 = vmax.f32 %v153_v8, 0.0 }
 0x11a   :  { %260 = vmatprep.mubr.f32.mxu1 %v156_v9 }
 0x11b   :  { %261 = vmatmul.mubr.f32.vlgmr.msra.gmra.mrb[0].mxu1 %v155_v10 }
 0x1ee   :  { %v351_v12 = vpop.f32.mrb[0].mxu1 }
 0x1ef   :  { %v352_v14 = vpop.f32.mrb[1].mxu1 }
 0x1f0   :  { %v353_v15 = vadd.f32 %v352_v14, %v351_v12 }
 0x1f2   :  { %v263_v16 = vadd.f32 %v353_v15, %v318_v13 }
 0x1f4   :  { %v269_v17 = vsel %vm268_vm1, %v263_v16, -inf  ;;  %v302_v42 = vsel %vm301_vm5, %v263_v16, 0.0 }
 0x1f5   :  { %270 = vmax.xlane.f32.xlu0 %v269_v17 }
 0x282   :  { %v271_v18 = vpop.xlane.xlu0 %270 }
 0x283   :  { %vm272_vm2 = vcmp.eq.f32.partialorder %v269_v17, %v271_v18  ;;  %v288_v19 = vsub.f32 %v269_v17, %v271_v18 }
 0x284   :  { %v273_v20 = vsel %vm272_vm2, %v267_v11, 128 }
 0x285   :  { %v275_v21 = vshra.s32 %v273_v20, 16  ;;  %v289_v22 = vmul.f32 1.442695, %v288_v19  ;;  %v274_v25 = vand.u32 65535, %v273_v20 }
 0x287   :  { %v277_v23 = vcvt.s32.f32 %v275_v21  ;;  %402 = vpow2.f32 %v289_v22  ;;  %v276_v27 = vcvt.s32.f32 %v274_v25 }
 0x289   :  { %278 = vmin.xlane.f32.xlu0 %v277_v23 }
 0x291   :  { %v403_v24 = vpop.eup %402 }
 0x292   :  { %291 = vadd.xlane.f32.xlu1 %v403_v24 }
 0x316   :  { %v279_v26 = vpop.xlane.xlu0 %278 }
 0x317   :  { %vm280_vm3 = vcmp.eq.f32.partialorder %v277_v23, %v279_v26  ;;  %v285_v32 = vcvt.f32.s32 %v279_v26 }
 0x318   :  { %v281_v28 = vsel %vm280_vm3, %v276_v27, inf }
 0x319   :  { %282 = vmin.xlane.f32.xlu1 %v281_v28  ;;  %v286_v35 = vshll.u32 %v285_v32, 16 }
 0x31f   :  { %v292_v29 = vpop.xlane.xlu1 %291 }
 0x320   :  { %404 = vlog2.f32 %v292_v29 }
 0x32a   :  { %v405_v30 = vpop.eup %404 }
 0x32b   :  { %v294_v31 = vmul.f32 0.6931472, %v405_v30 }
 0x32d   :  { %v295_v34 = vadd.f32 %v294_v31, %v271_v18 }
 0x32f   :  { %v297_v38 = vsub.f32 %v263_v16, %v295_v34 }
 0x3a6   :  { %v283_v33 = vpop.xlane.xlu1 %282 }
 0x3a7   :  { %v284_v36 = vcvt.f32.s32 %v283_v33 }
 0x3a9   :  { %v287_v37 = vadd.s32 %v286_v35, %v284_v36 }
 0x3ab   :  { %vm296_vm4 = vcmp.eq.s32.totalorder %v267_v11, %v287_v37  ;;  %v307_v40 = vcvt.s32.f32 %v287_v37 }
 0x3ac   :  { %v298_v39 = vsel %vm296_vm4, %v297_v38, 0.0 }
 0x3ad   :  { %299 = vadd.xlane.f32.xlu0 %v298_v39  ;;  %v308_v45 = vsel %vm306_vm7, %v307_v40, 0.0 }
 0x43a   :  { %v300_v41 = vpop.xlane.xlu0 %299 }
 0x43b   :  { %v304_v43 = vsel %vm303_vm6, %v300_v41, 0.0 }
 0x43c   :  { %v305_v44 = vadd.f32 %v304_v43, %v302_v42 }
 0x43e   :  { %v309_v46 = vadd.f32 %v308_v45, %v305_v44 }
 0x440   :  { %310 = vst [vmem:[%s564_s5] sm:$0xff] %v309_v46 }
 0x441   :  { %315 = vsyncpa [#allocation3], 1 }
 0x442   :  { %316 = vsyncpa [#allocation5], 1 }

</bundles_post_ra>
